<compile_context>
chip_gen: v6e
topology: v6e:2x2x1
jax: 0.10.0
libtpu: 0.0.40
codegen_flags: <defaults>
</compile_context>

<pallas_src>
import jax
import jax.numpy as jnp
from jax.experimental import pallas as pl
from jax.experimental.pallas import tpu as pltpu

_LANES = 128                 # lane-dense last dim (one full vreg width)
_TILE_ROWS = 4096            # 4096 x 128 x 4 B = 2 MiB per tile
_GRIDLESS_MAX_ROWS = 4096    # <= 2 MiB slab stays whole-array resident in VMEM


def _sign_kernel(step_ref, out_ref):
    s = step_ref[...]
    # Sign-bit copy: (sign bit of s) | (bit pattern of 1.0f) -> exactly +/-1.0.
    # Pure VALU work (AND/OR/compare/select); no EUP reciprocal, no divide.
    u = pltpu.bitcast(s, jnp.uint32)
    signed_one = pltpu.bitcast(
        (u & jnp.uint32(0x80000000)) | jnp.uint32(0x3F800000), jnp.float32
    )
    # Reference step/|step| semantics: 0/0, Inf/Inf and NaN/NaN are all NaN.
    bad = (s == 0.0) | ~jnp.isfinite(s)
    out_ref[...] = jnp.where(bad, jnp.float32(jnp.nan), signed_one)


def differentiable_choice_forward(step, x=None):
    """Pallas implementation of DifferentiableChoice.forward.

    `x` is accepted for API parity with the PyTorch module but is unused,
    exactly like the reference implementation.  `step` may have any shape /
    any f32 size: it is reshaped to a lane-dense (rows, 128) slab, run through
    either a gridless (small) or tiled double-buffered (large) pallas_call,
    and reshaped back.  Stack multiple DifferentiableChoice parameters into
    one array to amortize per-call overhead.
    """
    del x  # unused by the reference forward
    step = jnp.asarray(step, jnp.float32)
    orig_shape = step.shape
    numel = step.size
    if numel == 0:
        return jnp.zeros(orig_shape, jnp.float32)

    # ---- lane-dense canonicalization: (rows_pad, 128) slab ----
    rows = -(-numel // _LANES)
    if rows <= _GRIDLESS_MAX_ROWS:
        tiled = False
        rows_pad = -(-rows // 8) * 8               # sublane-aligned
    else:
        tiled = True
        rows_pad = -(-rows // _TILE_ROWS) * _TILE_ROWS  # whole tiles only

    total = rows_pad * _LANES
    flat = step.reshape(-1)
    if total != numel:
        # pad with 1.0 so padding never produces NaNs (sliced off anyway)
        flat = jnp.concatenate([flat, jnp.ones((total - numel,), jnp.float32)])
    slab = flat.reshape(rows_pad, _LANES)

    out_shape = jax.ShapeDtypeStruct((rows_pad, _LANES), jnp.float32)
    cost = pl.CostEstimate(flops=5 * total, transcendentals=0,
                           bytes_accessed=8 * total)

    if not tiled:
        # Whole slab resident in VMEM; no grid / pipeline scaffolding.
        out = pl.pallas_call(
            _sign_kernel,
            out_shape=out_shape,
            in_specs=[pl.BlockSpec(memory_space=pltpu.MemorySpace.VMEM)],
            out_specs=pl.BlockSpec(memory_space=pltpu.MemorySpace.VMEM),
            cost_estimate=cost,
        )(slab)
    else:
        # Streaming, double-buffered tile pipeline; "parallel" shards the row
        # stream across both TensorCores on v7x (no-op on v5e/v6e).
        out = pl.pallas_call(
            _sign_kernel,
            out_shape=out_shape,
            grid=(rows_pad // _TILE_ROWS,),
            in_specs=[pl.BlockSpec((_TILE_ROWS, _LANES), lambda i: (i, 0))],
            out_specs=pl.BlockSpec((_TILE_ROWS, _LANES), lambda i: (i, 0)),
            compiler_params=pltpu.CompilerParams(
                dimension_semantics=("parallel",)),
            cost_estimate=cost,
        )(slab)

    return out.reshape(-1)[:numel].reshape(orig_shape)


if __name__ == "__main__":
    key = jax.random.PRNGKey(0)
    k_step, k_x, k_rag = jax.random.split(key, 3)

    # Default module-style parameter shape (tile-aligned, one vreg).
    shape = (8, 128)
    step = jax.random.normal(k_step, shape, dtype=jnp.float32)
    # Example input x (ignored by forward, provided for API parity).
    x = jax.random.normal(k_x, (2, 4, 16, 16), dtype=jnp.float32)

    out = differentiable_choice_forward(step, x)
    out = jax.block_until_ready(out)

    ref = step / jnp.abs(step)
    assert out.shape == shape
    assert jnp.allclose(out, ref, equal_nan=True), "mismatch vs reference"
    assert jnp.all(jnp.abs(jnp.abs(out) - 1.0) < 1e-6), "output not +/-1"

    # Ragged small shape exercises the lane-dense pad/reshape path.
    rag_shape = (3, 5, 7)
    step_r = jax.random.normal(k_rag, rag_shape, dtype=jnp.float32)
    out_r = jax.block_until_ready(differentiable_choice_forward(step_r))
    ref_r = step_r / jnp.abs(step_r)
    assert out_r.shape == rag_shape
    assert jnp.allclose(out_r, ref_r, equal_nan=True), "ragged mismatch"

    print("KERNEL_OK")
</pallas_src>

<mosaic_0001>
module attributes {stable_mosaic.version = 11 : i64} {
  func.func @_sign_kernel(%arg0: memref<8x128xf32, #tpu.memory_space<vmem>>, %arg1: memref<8x128xf32, #tpu.memory_space<vmem>>) attributes {dimension_semantics = [], scalar_prefetch = 0 : i64, scratch_operands = 0 : i64, tpu.core_type = #tpu.core_type<tc>} {
    %c0 = arith.constant 0 : index
    %c0_0 = arith.constant 0 : index
    %0 = vector.load %arg0[%c0, %c0_0] : memref<8x128xf32, #tpu.memory_space<vmem>>, vector<8x128xf32>
    %1 = tpu.bitcast %0 : vector<8x128xf32> -> vector<8x128xi32>
    %c-2147483648_i32 = arith.constant -2147483648 : i32
    %2 = vector.broadcast %c-2147483648_i32 : i32 to vector<8x128xi32>
    %3 = arith.andi %1, %2 : vector<8x128xi32>
    %c1065353216_i32 = arith.constant 1065353216 : i32
    %4 = vector.broadcast %c1065353216_i32 : i32 to vector<8x128xi32>
    %5 = arith.ori %3, %4 : vector<8x128xi32>
    %6 = tpu.bitcast %5 : vector<8x128xi32> -> vector<8x128xf32>
    %cst = arith.constant 0.000000e+00 : f32
    %7 = vector.broadcast %cst : f32 to vector<8x128xf32>
    %8 = arith.cmpf oeq, %0, %7 : vector<8x128xf32>
    %9 = tpu.weird %0 : vector<8x128xf32> -> vector<8x128xi1>
    %cst_1 = arith.constant dense<true> : vector<8x128xi1>
    %10 = arith.xori %9, %cst_1 : vector<8x128xi1>
    %cst_2 = arith.constant dense<true> : vector<8x128xi1>
    %11 = arith.xori %10, %cst_2 : vector<8x128xi1>
    %12 = arith.ori %8, %11 : vector<8x128xi1>
    %cst_3 = arith.constant 0x7FC00000 : f32
    %13 = vector.broadcast %cst_3 : f32 to vector<8x128xf32>
    %14 = arith.select %12, %13, %6 : vector<8x128xi1>, vector<8x128xf32>
    %c0_4 = arith.constant 0 : index
    %c0_5 = arith.constant 0 : index
    %15 = vector.load %arg1[%c0_4, %c0_5] : memref<8x128xf32, #tpu.memory_space<vmem>>, vector<8x128xf32>
    tpu.vector_store %arg1[%c0_4, %c0_5], %14 {strides = array<i32>} : memref<8x128xf32, #tpu.memory_space<vmem>>, vector<8x128xf32>,
    return
  }
}

</mosaic_0001>

<bundles_post_ra>
// kernel: tpu_custom_call.1
= control target key start
LH: loop header
LB: loop body
LE: loop exit
PB: predicated region body
PF: predicated region fallthrough
CT: control target
= control target key end

     0   :  { %6 = vsyncpa [#allocation3], 0  ;;  %s110_s0 = inlined_call_operand.hbm [shape: f32[8,128], index: 0, kind: input, shape index: {}]   ;;  %s111_s1 = inlined_call_operand.hbm [shape: f32[8,128], index: 1, kind: output, shape index: {}]  }
   0x1   :  { %7 = vsyncpa [#allocation4], 0  ;;  %s92_s6 = smov [#allocation2]  }
   0x2   :  { %s14_s7 = sshll.u32 %s92_s6, 4  ;;  %s15_s7 = int_to_ptr.vmem [resolvable:$true] %s14_s7 }
   0x3   :  { %s56_s8 = scalar_lea.vmem %s15_s7, 128  ;;  %p61_p1 = scmp.lt.s32.totalorder %s15_s7, %s15_s7 }
   0x4   :  { %p57_p0 = scmp.ne.s32.totalorder %s15_s7, %s56_s8  ;;  %p62_p2 = scmp.lt.s32.totalorder %s56_s8, %s56_s8 }
   0x6   :  { %p63_p3 = por %p62_p2, %p61_p1 }
   0x8   :  { %p64_p4 = pnand %p63_p3, %p57_p0 }
   0xa   :  { %67 = shalt.err (!%p64_p4)
}
   0xb   :  { %17 = dma.hbm_to_vmem [thread:$0]  %s110_s0, 128, %s15_s7, [#allocation3]  }
   0xc   :  { %88 = dma.done.wait [#allocation3], 128  }
   0xd   :  { %89 = vsyncadd [#allocation3], 4294967168  ;;  %v21_v0 = vld [vmem:[#allocation2] sm:$0xff]  ;;  %s93_s11 = smov [#allocation5]  }
   0xe   :  { %v23_v1 = vand.u32 2147483648, %v21_v0  ;;  %vm26_vm0 = vcmp.eq.f32.partialorder %v21_v0, 0.0  ;;  %vm27_vm1 = vweird.f32 %v21_v0  ;;  %s37_s12 = sshll.u32 %s93_s11, 4  ;;  %s38_s12 = int_to_ptr.vmem [resolvable:$true] %s37_s12 }
   0xf   :  { %vm28_vm2 = vmor %vm26_vm0, %vm27_vm1  ;;  %s68_s13 = scalar_lea.vmem %s38_s12, 128  ;;  %p73_p6 = scmp.lt.s32.totalorder %s38_s12, %s38_s12 }
  0x10   :  { %v24_v2 = vor.u32 1065353216, %v23_v1  ;;  %p69_p5 = scmp.ne.s32.totalorder %s38_s12, %s68_s13  ;;  %p74_p7 = scmp.lt.s32.totalorder %s68_s13, %s68_s13 }
  0x12   :  { %v29_v3 = vsel %vm28_vm2, nan, %v24_v2  ;;  %p75_p8 = por %p74_p7, %p73_p6 }
  0x13   :  { %30 = vst [vmem:[#allocation5] sm:$0xff] %v29_v3 }
  0x14   :  { %p76_p9 = pnand %p75_p8, %p69_p5 }
  0x16   :  { %79 = shalt.err (!%p76_p9)
}
  0x17   :  { %40 = dma.vmem_to_hbm [thread:$0]  %s38_s12, 128, %s111_s1, [#allocation4]  }
  0x18   :  { %90 = dma.done.wait [#allocation4], 128  }
  0x19   :  { %91 = vsyncadd [#allocation4], 4294967168 }
  0x1a   :  { %44 = vsyncpa [#allocation3], 1 }
  0x1b   :  { %45 = vsyncpa [#allocation4], 1 }

</bundles_post_ra>
